<compile_context>
chip_gen: v6e
topology: v6e:2x2x1
jax: 0.10.0
libtpu: 0.0.40
codegen_flags: <defaults>
</compile_context>

<pallas_src>
import jax
import jax.numpy as jnp
from jax.experimental import pallas as pl
from jax.experimental.pallas import tpu as pltpu


def _h_swish_kernel(x_ref, o_ref):
    x = x_ref[...].astype(jnp.float32)
    # relu6(x + 3) / 6  ->  clamp(x + 3, 0, 6) * (1/6)
    hs = jnp.clip(x + 3.0, 0.0, 6.0) * (1.0 / 6.0)
    o_ref[...] = (x * hs).astype(o_ref.dtype)


def _h_swish_jnp(x):
    """Plain-jnp fallback for tiny ragged tails (< 128 elements)."""
    xf = x.astype(jnp.float32)
    return (xf * jnp.clip(xf + 3.0, 0.0, 6.0) * (1.0 / 6.0)).astype(x.dtype)


def _default_block_bytes():
    """Generation-aware block size: DMA-amortization sweet spot per chip."""
    try:
        kind = jax.devices()[0].device_kind.lower()
    except Exception:  # pragma: no cover - defensive
        kind = ""
    if "v5" in kind:
        return 2 * 1024 * 1024   # ~820 GB/s: 2 MiB step already ~5 us
    if "v6" in kind:
        return 4 * 1024 * 1024   # ~1.4 TB/s: halve per-step overhead share
    if "v7" in kind or "7x" in kind:
        return 8 * 1024 * 1024   # ~3.2 TB/s: 2 MiB step would be ~25% overhead
    return 4 * 1024 * 1024


def _h_swish_flat(flat, target_block_bytes):
    """Kernel path; flat.size must be a multiple of 128."""
    n = flat.shape[0]
    dtype = flat.dtype
    itemsize = dtype.itemsize
    # Minimum second-to-last tile dim per dtype: (8,128) f32, (16,128) bf16,
    # (32,128) int8/fp8.
    min_rows = {1: 32, 2: 16}.get(itemsize, 8)

    if target_block_bytes is None:
        target_block_bytes = _default_block_bytes()

    # ---- lane-dense slab (rows, cols): widest cols dividing n with at least
    # one full sublane tile of rows; default 128 always divides n here. ------
    cols = 128
    for c in (8192, 4096, 2048, 1024, 512, 256, 128):
        if n % c == 0 and n // c >= min_rows:
            cols = c
            break
    rows = n // cols
    x2d = flat.reshape(rows, cols)  # free: contiguous reshape

    # ---- block rows: ~target_block_bytes, multiple of min_rows -------------
    tr = (target_block_bytes // (cols * itemsize)) // min_rows * min_rows
    tr = max(min_rows, tr)
    if rows <= min_rows:
        tr = rows                                    # single full-array block
    else:
        tr = min(tr, (rows // min_rows) * min_rows)  # ragged last block is OK
        # Guarantee >= 2 grid steps whenever each half-block stays >= ~1 MiB,
        # so the parallel grid axis can shard across both TCs on 2-TC chips.
        half = (rows // 2) // min_rows * min_rows
        if half >= min_rows and half * cols * itemsize >= (1 << 20):
            tr = min(tr, half)

    grid = (pl.cdiv(rows, tr),)

    # Double-buffered in+out = 4x block; bump limit only when needed (e.g.
    # 8 MiB blocks on v7x -> 40 MiB, still well under 64 MiB physical VMEM).
    vmem_limit = max(32 * 1024 * 1024, 4 * tr * cols * itemsize + 8 * 1024 * 1024)

    out2d = pl.pallas_call(
        _h_swish_kernel,
        out_shape=jax.ShapeDtypeStruct((rows, cols), dtype),
        grid=grid,
        in_specs=[pl.BlockSpec((tr, cols), lambda i: (i, 0))],
        out_specs=pl.BlockSpec((tr, cols), lambda i: (i, 0)),
        compiler_params=pltpu.CompilerParams(
            # "parallel" shards the grid across TensorCores on 2-TC chips.
            # TODO(synk): A/B pltpu.CORE_PARALLEL on v7x once timing is available.
            dimension_semantics=("parallel",),
            vmem_limit_bytes=vmem_limit,
        ),
        cost_estimate=pl.CostEstimate(
            flops=4 * n, transcendentals=0, bytes_accessed=2 * n * itemsize
        ),
    )(x2d)
    return out2d.reshape(-1)


def h_swish(x, *, target_block_bytes=None):
    """Elementwise hard-swish via Pallas. x: any shape (NCHW in the demo)."""
    orig_shape = x.shape
    n = x.size
    if n == 0:
        return x

    flat = x.reshape(-1)  # free: contiguous reshape
    n_main = (n // 128) * 128

    if n_main == 0:
        # Tiny ragged input: plain jnp, no kernel / no padding copies.
        return _h_swish_jnp(flat).reshape(orig_shape)

    if n_main == n:
        out_flat = _h_swish_flat(flat, target_block_bytes)
    else:
        # Ragged n: kernel on the 128-aligned prefix, tiny tail via jnp
        # (avoids the pad + slice full-array HBM passes).
        main = _h_swish_flat(flat[:n_main], target_block_bytes)
        tail = _h_swish_jnp(flat[n_main:])
        out_flat = jnp.concatenate([main, tail])

    return out_flat.reshape(orig_shape)


def h_swish_ref(x):
    return x * jnp.clip(x + 3.0, 0.0, 6.0) / 6.0


if __name__ == "__main__":
    key = jax.random.PRNGKey(0)

    # Main case: NCHW activation, n a multiple of 128 (pure kernel path).
    x = jax.random.normal(key, (2, 4, 16, 16), dtype=jnp.float32) * 4.0
    y = h_swish(x)
    jax.block_until_ready(y)
    y_ref = h_swish_ref(x)
    assert y.shape == x.shape and y.dtype == x.dtype
    assert jnp.allclose(y, y_ref, atol=1e-6, rtol=1e-6)

    # Ragged case: n = 429 (kernel on 384-elem prefix + jnp tail).
    x2 = jax.random.normal(jax.random.PRNGKey(1), (1, 3, 11, 13), dtype=jnp.float32) * 4.0
    y2 = h_swish(x2)
    jax.block_until_ready(y2)
    assert y2.shape == x2.shape and y2.dtype == x2.dtype
    assert jnp.allclose(y2, h_swish_ref(x2), atol=1e-6, rtol=1e-6)

    print("KERNEL_OK")
</pallas_src>

<mosaic_0001>
module attributes {stable_mosaic.version = 11 : i64} {
  func.func @_h_swish_kernel(%arg0: i32, %arg1: memref<8x256xf32, #tpu.memory_space<vmem>>, %arg2: memref<8x256xf32, #tpu.memory_space<vmem>>) attributes {dimension_semantics = [#tpu.dimension_semantics<parallel>], iteration_bounds = array<i64: 1>, scalar_prefetch = 0 : i64, scratch_operands = 0 : i64, tpu.core_type = #tpu.core_type<tc>, window_params = [{transform_indices = @transform_0, window_bounds = array<i64: 8, 256>}, {transform_indices = @transform_1, window_bounds = array<i64: 8, 256>}]} {
    %c0 = arith.constant 0 : index
    %c0_0 = arith.constant 0 : index
    %0 = vector.load %arg1[%c0, %c0_0] : memref<8x256xf32, #tpu.memory_space<vmem>>, vector<8x256xf32>
    %cst = arith.constant 3.000000e+00 : f32
    %1 = vector.broadcast %cst : f32 to vector<8x256xf32>
    %2 = arith.addf %0, %1 : vector<8x256xf32>
    %cst_1 = arith.constant 0.000000e+00 : f32
    %cst_2 = arith.constant 6.000000e+00 : f32
    %3 = vector.broadcast %cst_1 : f32 to vector<8x256xf32>
    %4 = arith.maximumf %3, %2 : vector<8x256xf32>
    %5 = vector.broadcast %cst_2 : f32 to vector<8x256xf32>
    %6 = arith.minimumf %5, %4 : vector<8x256xf32>
    %cst_3 = arith.constant 0.166666672 : f32
    %7 = vector.broadcast %cst_3 : f32 to vector<8x256xf32>
    %8 = arith.mulf %6, %7 : vector<8x256xf32>
    %9 = arith.mulf %0, %8 : vector<8x256xf32>
    %c0_4 = arith.constant 0 : index
    %c0_5 = arith.constant 0 : index
    %10 = vector.load %arg2[%c0_4, %c0_5] : memref<8x256xf32, #tpu.memory_space<vmem>>, vector<8x256xf32>
    tpu.vector_store %arg2[%c0_4, %c0_5], %9 {strides = array<i32>} : memref<8x256xf32, #tpu.memory_space<vmem>>, vector<8x256xf32>,
    return
  }
  func.func @transform_0(%arg0: i32) -> (i32, i32) {
    %c0_i32 = arith.constant 0 : i32
    %c0_i32_0 = arith.constant 0 : i32
    return %arg0, %c0_i32 : i32, i32
  }
  func.func @transform_1(%arg0: i32) -> (i32, i32) {
    %c0_i32 = arith.constant 0 : i32
    %c0_i32_0 = arith.constant 0 : i32
    return %arg0, %c0_i32 : i32, i32
  }
}

</mosaic_0001>

<bundles_post_ra>
// kernel: tpu_custom_call.1
= control target key start
LH: loop header
LB: loop body
LE: loop exit
PB: predicated region body
PF: predicated region fallthrough
CT: control target
= control target key end

     0   :  { %6 = vsyncpa [#allocation3], 0  ;;  %s114_s0 = inlined_call_operand.hbm [shape: f32[8,256], index: 0, kind: input, shape index: {}]   ;;  %s115_s1 = inlined_call_operand.hbm [shape: f32[8,256], index: 1, kind: output, shape index: {}]  }
   0x1   :  { %7 = vsyncpa [#allocation4], 0  ;;  %s96_s6 = smov [#allocation2]  }
   0x2   :  { %s14_s7 = sshll.u32 %s96_s6, 4  ;;  %s15_s7 = int_to_ptr.vmem [resolvable:$true] %s14_s7 }
   0x3   :  { %s60_s8 = scalar_lea.vmem %s15_s7, 256  ;;  %p65_p1 = scmp.lt.s32.totalorder %s15_s7, %s15_s7 }
   0x4   :  { %p61_p0 = scmp.ne.s32.totalorder %s15_s7, %s60_s8  ;;  %p66_p2 = scmp.lt.s32.totalorder %s60_s8, %s60_s8 }
   0x6   :  { %p67_p3 = por %p66_p2, %p65_p1 }
   0x8   :  { %p68_p4 = pnand %p67_p3, %p61_p0 }
   0xa   :  { %71 = shalt.err (!%p68_p4)
}
   0xb   :  { %17 = dma.hbm_to_vmem [thread:$0]  %s114_s0, 256, %s15_s7, [#allocation3]  }
   0xc   :  { %92 = dma.done.wait [#allocation3], 256  }
   0xd   :  { %93 = vsyncadd [#allocation3], 4294967040  ;;  %v21_v0 = vld [vmem:[#allocation2] sm:$0xff]  ;;  %v22_v1 = vld [vmem:[#allocation2 + $0x8] sm:$0xff]  ;;  %s97_s11 = smov [#allocation5]  }
   0xe   :  { %v23_v2 = vadd.f32 3.0, %v21_v0  ;;  %v24_v3 = vadd.f32 3.0, %v22_v1  ;;  %s41_s12 = sshll.u32 %s97_s11, 4  ;;  %s42_s12 = int_to_ptr.vmem [resolvable:$true] %s41_s12 }
   0xf   :  { %s72_s0 = scalar_lea.vmem %s42_s12, 256  ;;  %p77_p6 = scmp.lt.s32.totalorder %s42_s12, %s42_s12 }
  0x10   :  { %v25_v4 = vmax.f32 %v23_v2, 0.0  ;;  %v26_v5 = vmax.f32 %v24_v3, 0.0  ;;  %p73_p5 = scmp.ne.s32.totalorder %s42_s12, %s72_s0  ;;  %p78_p7 = scmp.lt.s32.totalorder %s72_s0, %s72_s0 }
  0x12   :  { %v27_v6 = vmin.f32 %v25_v4, 6.0  ;;  %v28_v7 = vmin.f32 %v26_v5, 6.0  ;;  %p79_p8 = por %p78_p7, %p77_p6 }
  0x14   :  { %v29_v8 = vmul.f32 0.16666667, %v27_v6  ;;  %v30_v9 = vmul.f32 0.16666667, %v28_v7  ;;  %p80_p9 = pnand %p79_p8, %p73_p5 }
  0x16   :  { %v31_v10 = vmul.f32 %v29_v8, %v21_v0  ;;  %v32_v11 = vmul.f32 %v30_v9, %v22_v1 }
  0x18   :  { %33 = vst [vmem:[#allocation5] sm:$0xff] %v31_v10  ;;  %34 = vst [vmem:[#allocation5 + $0x8] sm:$0xff] %v32_v11 }
  0x19   :  { %83 = shalt.err (!%p80_p9)
}
  0x1a   :  { %44 = dma.vmem_to_hbm [thread:$0]  %s42_s12, 256, %s115_s1, [#allocation4]  }
  0x1b   :  { %94 = dma.done.wait [#allocation4], 256  }
  0x1c   :  { %95 = vsyncadd [#allocation4], 4294967040 }
  0x1d   :  { %48 = vsyncpa [#allocation3], 1 }
  0x1e   :  { %49 = vsyncpa [#allocation4], 1 }

</bundles_post_ra>
